<compile_context>
chip_gen: v5e
topology: v5e:2x2
jax: 0.10.0
libtpu: 0.0.40
codegen_flags: <defaults>
</compile_context>

<pallas_src>
import math
import functools

import jax
import jax.numpy as jnp
from jax import lax
from jax.experimental import pallas as pl
from jax.experimental.pallas import tpu as pltpu


def _mha_kernel(q_ref, k_ref,
                wq_ref, bq_ref, wk_ref, bk_ref, wv_ref, bv_ref,
                wo_ref, bo_ref,
                x_ref, amax_ref,
                *scratch,
                h: int, d_model_h: int):
    """One batch tile (Bt sequences) per grid step.

    q_ref : (Bt, Lq, d_q)        k_ref   : (Bt, Lk, d_k)
    x_ref : (Bt, Lq, d_model)    amax_ref: (1, 1, Bt*Lq)  (lane-dense)
    scratch (only when h > 1): (Bt*Lq, d_model) activation-dtype context slab.
    """
    Bt, Lq, d_q = q_ref.shape
    _, Lk, d_k = k_ref.shape
    d_model = h * d_model_h
    mm_dtype = x_ref.dtype            # matmul operand dtype (bf16 -> full-rate MXU)
    use_slab = h > 1
    ctx_ref = scratch[0] if use_slab else None

    # Flatten the batch tile into the matmul M dimension (fills MXU tiles).
    # The wrapper pads Lq to a multiple of 8, so this reshape is a free
    # sublane stack (no relayout copy).
    qf = q_ref[...].reshape(Bt * Lq, d_q)
    kf = k_ref[...].reshape(Bt * Lk, d_k)

    # Input projections: activation-dtype operands, f32 accumulation on the MXU.
    # 1/sqrt(dh) is folded into Q once (cheaper than scaling every score tensor).
    scale = 1.0 / math.sqrt(d_model_h)
    Qc = ((jnp.dot(qf, wq_ref[...], preferred_element_type=jnp.float32)
           + bq_ref[...]) * scale).astype(mm_dtype)
    Kc = (jnp.dot(kf, wk_ref[...], preferred_element_type=jnp.float32)
          + bk_ref[...]).astype(mm_dtype)
    Vc = (jnp.dot(kf, wv_ref[...], preferred_element_type=jnp.float32)
          + bv_ref[...]).astype(mm_dtype)

    # Batched matmuls: batch dim 0, contraction on last dims (no explicit K^T).
    qk_dims = (((2,), (2,)), ((0,), (0,)))   # (Bt,Lq,dh) x (Bt,Lk,dh) -> (Bt,Lq,Lk)
    pv_dims = (((2,), (1,)), ((0,), (0,)))   # (Bt,Lq,Lk) x (Bt,Lk,dh) -> (Bt,Lq,dh)

    amax = None            # running max over heads of max_k softmax == 1/sum(exp)
    ctx_single = None
    for head in range(h):                    # h is static -> unrolled
        lo, hi = head * d_model_h, (head + 1) * d_model_h
        Qh = Qc[:, lo:hi].reshape(Bt, Lq, d_model_h)
        Kh = Kc[:, lo:hi].reshape(Bt, Lk, d_model_h)
        Vh = Vc[:, lo:hi].reshape(Bt, Lk, d_model_h)

        s = lax.dot_general(Qh, Kh, qk_dims,
                            preferred_element_type=jnp.float32)     # (Bt,Lq,Lk)
        m = jnp.max(s, axis=-1, keepdims=True)
        e = jnp.exp(s - m)                                          # f32 softmax
        r = pl.reciprocal(jnp.sum(e, axis=-1, keepdims=True), approx=True)
        p = (e * r).astype(mm_dtype)                                # bf16 into PV

        ctx_h = lax.dot_general(p, Vh, pv_dims,
                                preferred_element_type=jnp.float32)  # (Bt,Lq,dh)
        if use_slab:
            ctx_ref[:, lo:hi] = ctx_h.reshape(Bt * Lq, d_model_h).astype(mm_dtype)
        else:
            ctx_single = ctx_h.reshape(Bt * Lq, d_model).astype(mm_dtype)

        # max_k softmax(s)_k == exp(m - m) * r == r exactly: reuse the reciprocal
        # instead of an extra cross-lane max reduce over p (XLU slot saved).
        amax = r if amax is None else jnp.maximum(amax, r)

    ctx_all = ctx_ref[...] if use_slab else ctx_single

    # Output projection on the flattened (Bt*Lq, d_model) context slab.
    out = jnp.dot(ctx_all, wo_ref[...],
                  preferred_element_type=jnp.float32) + bo_ref[...]

    x_ref[...] = out.reshape(Bt, Lq, d_model).astype(x_ref.dtype)
    # Lane-dense store: all Bt*Lq attention maxima sit on the lane axis.
    amax_ref[...] = amax.reshape(1, 1, Bt * Lq).astype(amax_ref.dtype)


def _pick_batch_tile(B, Lq, target_rows):
    """Batch tile so Bt*Lq roughly fills the MXU M dimension while keeping
    >= 2 parallel grid steps (v7x has two TensorCores) whenever B >= 2."""
    bt = max(1, min(B, target_rows // max(Lq, 1)))
    if B >= 2:
        bt = min(bt, pl.cdiv(B, 2))
    return bt


def multi_head_attention(query, key, params, *, h=1):
    """query: (B, Lq, d_q), key: (B, Lk, d_k). Returns (x, norm_x, attn_maxpool)."""
    B, Lq, d_q = query.shape
    _, Lk, d_k = key.shape
    wq, bq, wk, bk, wv, bv, wo, bo = params
    d_model = wq.shape[1]
    assert d_model % h == 0
    d_model_h = d_model // h
    act_dt = query.dtype
    itemsize = jnp.dtype(act_dt).itemsize

    # Smaller batch tiles on 64 MiB-VMEM parts (v7x); larger on v5e/v6e.
    try:
        vmem_cap = int(getattr(pltpu.get_tpu_info(), "vmem_capacity_bytes",
                               64 * 2**20))
    except Exception:
        vmem_cap = 64 * 2**20
    target_rows = 256 if vmem_cap <= 64 * 2**20 else 512

    # Pad Lq to a multiple of 8 so the in-kernel flatten is a free sublane
    # stack.  (Lk is NOT padded: zero-padding keys would change the softmax;
    # that needs the key_mask path — see TODO at top.)
    Lq_pad = -(-Lq // 8) * 8
    if Lq_pad != Lq:
        query = jnp.pad(query, ((0, 0), (0, Lq_pad - Lq), (0, 0)))

    Bt = _pick_batch_tile(B, Lq_pad, target_rows)
    steps = pl.cdiv(B, Bt)
    B_pad = steps * Bt
    if B_pad != B:
        query = jnp.pad(query, ((0, B_pad - B), (0, 0), (0, 0)))
        key = jnp.pad(key, ((0, B_pad - B), (0, 0), (0, 0)))

    kernel = functools.partial(_mha_kernel, h=h, d_model_h=d_model_h)

    batch_map3 = lambda b: (b, 0, 0)
    # Weights / biases are grid-invariant: keep a single whole-array copy in
    # VMEM (no per-step double-buffering -> half the weight VMEM footprint).
    weight_spec = pl.BlockSpec(memory_space=pltpu.MemorySpace.VMEM)

    flops = 2 * (B_pad * Lq_pad * d_q * d_model             # Q projection
                 + 2 * B_pad * Lk * d_k * d_model           # K, V projections
                 + 2 * B_pad * h * Lq_pad * Lk * d_model_h  # QK^T and PV
                 + B_pad * Lq_pad * d_model * d_model)      # output projection
    bytes_accessed = int(sum(int(a.size) * a.dtype.itemsize
                             for a in (query, key, *params))
                         + itemsize * B_pad * Lq_pad * d_model
                         + 4 * B_pad * Lq_pad)

    # Per-step VMEM budget: double-buffered activation blocks + single-copy
    # weights + output blocks + ctx slab + live f32 temporaries (Q/K/V
    # projections and per-head score tensors), with 2x headroom.
    w_bytes = sum(int(a.size) * a.dtype.itemsize for a in params)
    est = (2 * (Bt * Lq_pad * d_q + Bt * Lk * d_k) * itemsize
           + w_bytes
           + 2 * (Bt * Lq_pad * d_model * itemsize + Bt * Lq_pad * 4)
           + (Bt * Lq_pad * d_model * itemsize if h > 1 else 0)
           + 4 * (3 * Bt * Lq_pad * d_model + 3 * Bt * Lq_pad * Lk)
           + 3 * Bt * Lq_pad * d_model * itemsize)
    vmem_limit = int(max(32 * 2**20, min(int(0.9 * vmem_cap), 2 * est)))

    scratch_shapes = ([pltpu.VMEM((Bt * Lq_pad, d_model), act_dt)]
                      if h > 1 else [])

    x_full, amax_full = pl.pallas_call(
        kernel,
        grid=(steps,),
        in_specs=[
            pl.BlockSpec((Bt, Lq_pad, d_q), batch_map3),
            pl.BlockSpec((Bt, Lk, d_k), batch_map3),
            weight_spec, weight_spec, weight_spec, weight_spec,
            weight_spec, weight_spec, weight_spec, weight_spec,
        ],
        out_specs=[
            pl.BlockSpec((Bt, Lq_pad, d_model), batch_map3),
            pl.BlockSpec((1, 1, Bt * Lq_pad), batch_map3),
        ],
        out_shape=[
            jax.ShapeDtypeStruct((B_pad, Lq_pad, d_model), act_dt),
            jax.ShapeDtypeStruct((steps, 1, Bt * Lq_pad), jnp.float32),
        ],
        scratch_shapes=scratch_shapes,
        compiler_params=pltpu.CompilerParams(
            dimension_semantics=("parallel",),
            vmem_limit_bytes=vmem_limit),
        cost_estimate=pl.CostEstimate(
            flops=int(flops),
            transcendentals=int(B_pad * h * Lq_pad * Lk),
            bytes_accessed=bytes_accessed),
    )(query, key, wq, bq, wk, bk, wv, bv, wo, bo)

    # Strip batch / query-length padding; re-expose attn_maxpool as (B, 1, Lq).
    x = x_full[:B, :Lq]
    amax = amax_full.reshape(B_pad, Lq_pad)[:B, :Lq][:, None, :]
    norm_x = x                # forward assigns norm_x = x (LayerNorm unused)
    return x, norm_x, amax


def _reference(query, key, params, *, h=1):
    """Pure-JAX f32 reference mirroring the PyTorch forward (eval mode)."""
    query = query.astype(jnp.float32)
    key = key.astype(jnp.float32)
    wq, bq, wk, bk, wv, bv, wo, bo = [p.astype(jnp.float32) for p in params]
    d_model = wq.shape[1]
    dh = d_model // h
    B, Lq, _ = query.shape
    Q = (query @ wq + bq).reshape(B, Lq, h, dh).transpose(0, 2, 1, 3)
    K = (key @ wk + bk).reshape(B, -1, h, dh).transpose(0, 2, 1, 3)
    V = (key @ wv + bv).reshape(B, -1, h, dh).transpose(0, 2, 1, 3)
    scores = jnp.einsum("bhqd,bhkd->bhqk", Q, K) / math.sqrt(dh)
    attn = jax.nn.softmax(scores, axis=-1)
    ctx = jnp.einsum("bhqk,bhkd->bhqd", attn, V)
    ctx = ctx.transpose(0, 2, 1, 3).reshape(B, Lq, d_model)
    x = ctx @ wo + bo
    amax = attn.max(axis=1).max(axis=-1)[:, None, :]
    return x, x, amax


if __name__ == "__main__":
    # Small deterministic shapes consistent with the module.
    B, Lq, Lk = 2, 8, 8
    d_q, d_k, d_model, h = 32, 32, 64, 1

    root = jax.random.PRNGKey(0)
    keys = jax.random.split(root, 10)

    act_dt = jnp.bfloat16   # bf16 activations/weights -> full-rate MXU path
    query = jax.random.normal(keys[0], (B, Lq, d_q), dtype=jnp.float32).astype(act_dt)
    key_in = jax.random.normal(keys[1], (B, Lk, d_k), dtype=jnp.float32).astype(act_dt)

    def linear_params(kw, kb, d_in, d_out):
        # PyTorch Linear shapes: W (out, in), b (out,).  Pre-transpose W to
        # (in, out) and make the bias 2-D (1, out) for the kernel.
        w = jax.random.normal(kw, (d_out, d_in), dtype=jnp.float32) * 0.05
        b = jax.random.normal(kb, (d_out,), dtype=jnp.float32) * 0.05
        return w.T.astype(act_dt), b[None, :].astype(act_dt)

    wq, bq = linear_params(keys[2], keys[3], d_q, d_model)
    wk, bk = linear_params(keys[4], keys[5], d_k, d_model)
    wv, bv = linear_params(keys[6], keys[7], d_k, d_model)
    wo, bo = linear_params(keys[8], keys[9], d_model, d_model)
    params = (wq, bq, wk, bk, wv, bv, wo, bo)

    x, norm_x, attn_maxpool = multi_head_attention(query, key_in, params, h=h)
    jax.block_until_ready((x, norm_x, attn_maxpool))

    # Correctness check against a pure-JAX f32 reference (tolerances account
    # for bf16 matmul operands and the EUP approximate softmax reciprocal).
    xr, _, amr = _reference(query, key_in, params, h=h)
    assert x.shape == (B, Lq, d_model)
    assert attn_maxpool.shape == (B, 1, Lq)
    assert jnp.allclose(x.astype(jnp.float32), xr, atol=2e-2, rtol=5e-2), \
        "output mismatch"
    assert jnp.allclose(attn_maxpool.astype(jnp.float32), amr,
                        atol=1e-2, rtol=1e-2), "attn_maxpool mismatch"

    print("KERNEL_OK")
</pallas_src>

<mosaic_0001>
module attributes {stable_mosaic.version = 11 : i64} {
  func.func @_mha_kernel(%arg0: i32, %arg1: memref<1x8x32xbf16, #tpu.memory_space<vmem>>, %arg2: memref<1x8x32xbf16, #tpu.memory_space<vmem>>, %arg3: memref<32x64xbf16, #tpu.memory_space<vmem>>, %arg4: memref<1x64xbf16, #tpu.memory_space<vmem>>, %arg5: memref<32x64xbf16, #tpu.memory_space<vmem>>, %arg6: memref<1x64xbf16, #tpu.memory_space<vmem>>, %arg7: memref<32x64xbf16, #tpu.memory_space<vmem>>, %arg8: memref<1x64xbf16, #tpu.memory_space<vmem>>, %arg9: memref<64x64xbf16, #tpu.memory_space<vmem>>, %arg10: memref<1x64xbf16, #tpu.memory_space<vmem>>, %arg11: memref<1x8x64xbf16, #tpu.memory_space<vmem>>, %arg12: memref<1x1x8xf32, #tpu.memory_space<vmem>>) attributes {dimension_semantics = [#tpu.dimension_semantics<parallel>], iteration_bounds = array<i64: 2>, scalar_prefetch = 0 : i64, scratch_operands = 0 : i64, tpu.core_type = #tpu.core_type<tc>, window_params = [{transform_indices = @transform_0, window_bounds = array<i64: 1, 8, 32>}, {transform_indices = @transform_1, window_bounds = array<i64: 1, 8, 32>}, {pipeline_mode = #tpu.pipeline_mode<synchronous>, transform_indices = @transform_2, window_bounds = array<i64: 32, 64>}, {pipeline_mode = #tpu.pipeline_mode<synchronous>, transform_indices = @transform_3, window_bounds = array<i64: 1, 64>}, {pipeline_mode = #tpu.pipeline_mode<synchronous>, transform_indices = @transform_4, window_bounds = array<i64: 32, 64>}, {pipeline_mode = #tpu.pipeline_mode<synchronous>, transform_indices = @transform_5, window_bounds = array<i64: 1, 64>}, {pipeline_mode = #tpu.pipeline_mode<synchronous>, transform_indices = @transform_6, window_bounds = array<i64: 32, 64>}, {pipeline_mode = #tpu.pipeline_mode<synchronous>, transform_indices = @transform_7, window_bounds = array<i64: 1, 64>}, {pipeline_mode = #tpu.pipeline_mode<synchronous>, transform_indices = @transform_8, window_bounds = array<i64: 64, 64>}, {pipeline_mode = #tpu.pipeline_mode<synchronous>, transform_indices = @transform_9, window_bounds = array<i64: 1, 64>}, {transform_indices = @transform_10, window_bounds = array<i64: 1, 8, 64>}, {transform_indices = @transform_11, window_bounds = array<i64: 1, 1, 8>}]} {
    %c0 = arith.constant 0 : index
    %c0_0 = arith.constant 0 : index
    %c0_1 = arith.constant 0 : index
    %0 = vector.load %arg1[%c0, %c0_0, %c0_1] : memref<1x8x32xbf16, #tpu.memory_space<vmem>>, vector<1x8x32xbf16>
    %1 = vector.shape_cast %0 : vector<1x8x32xbf16> to vector<8x32xbf16>
    %c0_2 = arith.constant 0 : index
    %c0_3 = arith.constant 0 : index
    %c0_4 = arith.constant 0 : index
    %2 = vector.load %arg2[%c0_2, %c0_3, %c0_4] : memref<1x8x32xbf16, #tpu.memory_space<vmem>>, vector<1x8x32xbf16>
    %3 = vector.shape_cast %2 : vector<1x8x32xbf16> to vector<8x32xbf16>
    %c0_5 = arith.constant 0 : index
    %c0_6 = arith.constant 0 : index
    %4 = vector.load %arg3[%c0_5, %c0_6] : memref<32x64xbf16, #tpu.memory_space<vmem>>, vector<32x64xbf16>
    %cst = arith.constant dense<0.000000e+00> : vector<8x64xf32>
    %5 = tpu.matmul %1, %4, %cst {dimension_numbers = #tpu.dot_dimension_numbers<[1], [0], [0], [1], [0, 0, 1, 1], [], []>} : vector<8x32xbf16>, vector<32x64xbf16>, vector<8x64xf32> -> vector<8x64xf32>
    %c0_7 = arith.constant 0 : index
    %c0_8 = arith.constant 0 : index
    %6 = vector.load %arg4[%c0_7, %c0_8] : memref<1x64xbf16, #tpu.memory_space<vmem>>, vector<1x64xbf16>
    %7 = arith.extf %6 : vector<1x64xbf16> to vector<1x64xf32>
    %8 = vector.broadcast %7 : vector<1x64xf32> to vector<8x64xf32>
    %9 = arith.addf %5, %8 : vector<8x64xf32>
    %cst_9 = arith.constant 1.250000e-01 : f32
    %10 = vector.broadcast %cst_9 : f32 to vector<8x64xf32>
    %11 = arith.mulf %9, %10 : vector<8x64xf32>
    %12 = arith.truncf %11 : vector<8x64xf32> to vector<8x64xbf16>
    %c0_10 = arith.constant 0 : index
    %c0_11 = arith.constant 0 : index
    %13 = vector.load %arg5[%c0_10, %c0_11] : memref<32x64xbf16, #tpu.memory_space<vmem>>, vector<32x64xbf16>
    %cst_12 = arith.constant dense<0.000000e+00> : vector<8x64xf32>
    %14 = tpu.matmul %3, %13, %cst_12 {dimension_numbers = #tpu.dot_dimension_numbers<[1], [0], [0], [1], [0, 0, 1, 1], [], []>} : vector<8x32xbf16>, vector<32x64xbf16>, vector<8x64xf32> -> vector<8x64xf32>
    %c0_13 = arith.constant 0 : index
    %c0_14 = arith.constant 0 : index
    %15 = vector.load %arg6[%c0_13, %c0_14] : memref<1x64xbf16, #tpu.memory_space<vmem>>, vector<1x64xbf16>
    %16 = arith.extf %15 : vector<1x64xbf16> to vector<1x64xf32>
    %17 = vector.broadcast %16 : vector<1x64xf32> to vector<8x64xf32>
    %18 = arith.addf %14, %17 : vector<8x64xf32>
    %19 = arith.truncf %18 : vector<8x64xf32> to vector<8x64xbf16>
    %c0_15 = arith.constant 0 : index
    %c0_16 = arith.constant 0 : index
    %20 = vector.load %arg7[%c0_15, %c0_16] : memref<32x64xbf16, #tpu.memory_space<vmem>>, vector<32x64xbf16>
    %cst_17 = arith.constant dense<0.000000e+00> : vector<8x64xf32>
    %21 = tpu.matmul %3, %20, %cst_17 {dimension_numbers = #tpu.dot_dimension_numbers<[1], [0], [0], [1], [0, 0, 1, 1], [], []>} : vector<8x32xbf16>, vector<32x64xbf16>, vector<8x64xf32> -> vector<8x64xf32>
    %c0_18 = arith.constant 0 : index
    %c0_19 = arith.constant 0 : index
    %22 = vector.load %arg8[%c0_18, %c0_19] : memref<1x64xbf16, #tpu.memory_space<vmem>>, vector<1x64xbf16>
    %23 = arith.extf %22 : vector<1x64xbf16> to vector<1x64xf32>
    %24 = vector.broadcast %23 : vector<1x64xf32> to vector<8x64xf32>
    %25 = arith.addf %21, %24 : vector<8x64xf32>
    %26 = arith.truncf %25 : vector<8x64xf32> to vector<8x64xbf16>
    %27 = vector.shape_cast %12 : vector<8x64xbf16> to vector<1x8x64xbf16>
    %28 = vector.shape_cast %19 : vector<8x64xbf16> to vector<1x8x64xbf16>
    %29 = vector.shape_cast %26 : vector<8x64xbf16> to vector<1x8x64xbf16>
    %cst_20 = arith.constant dense<0.000000e+00> : vector<1x8x8xf32>
    %30 = tpu.matmul %27, %28, %cst_20 {dimension_numbers = #tpu.dot_dimension_numbers<[2], [2], [1], [1], [0, 0, 0, 1, 1, 1], [0], [0]>} : vector<1x8x64xbf16>, vector<1x8x64xbf16>, vector<1x8x8xf32> -> vector<1x8x8xf32>
    %cst_21 = arith.constant dense<0xFF800000> : vector<1x8xf32>
    %31 = vector.multi_reduction <maximumf>, %30, %cst_21 [2] : vector<1x8x8xf32> to vector<1x8xf32>
    %32 = vector.shape_cast %31 : vector<1x8xf32> to vector<1x8x1xf32>
    %33 = vector.broadcast %32 : vector<1x8x1xf32> to vector<1x8x8xf32>
    %34 = arith.subf %30, %33 : vector<1x8x8xf32>
    %35 = math.exp %34 : vector<1x8x8xf32>
    %cst_22 = arith.constant dense<0.000000e+00> : vector<1x8xf32>
    %36 = vector.multi_reduction <add>, %35, %cst_22 [2] : vector<1x8x8xf32> to vector<1x8xf32>
    %37 = vector.shape_cast %36 : vector<1x8xf32> to vector<1x8x1xf32>
    %38 = tpu.reciprocal %37 {approx = true} : vector<1x8x1xf32> -> vector<1x8x1xf32>
    %39 = vector.broadcast %38 : vector<1x8x1xf32> to vector<1x8x8xf32>
    %40 = arith.mulf %35, %39 : vector<1x8x8xf32>
    %41 = arith.truncf %40 : vector<1x8x8xf32> to vector<1x8x8xbf16>
    %cst_23 = arith.constant dense<0.000000e+00> : vector<1x8x64xf32>
    %42 = tpu.matmul %41, %29, %cst_23 {dimension_numbers = #tpu.dot_dimension_numbers<[2], [1], [1], [2], [0, 0, 0, 1, 1, 2], [0], [0]>} : vector<1x8x8xbf16>, vector<1x8x64xbf16>, vector<1x8x64xf32> -> vector<1x8x64xf32>
    %43 = vector.shape_cast %42 : vector<1x8x64xf32> to vector<8x64xf32>
    %44 = arith.truncf %43 : vector<8x64xf32> to vector<8x64xbf16>
    %c0_24 = arith.constant 0 : index
    %c0_25 = arith.constant 0 : index
    %45 = vector.load %arg9[%c0_24, %c0_25] : memref<64x64xbf16, #tpu.memory_space<vmem>>, vector<64x64xbf16>
    %cst_26 = arith.constant dense<0.000000e+00> : vector<8x64xf32>
    %46 = tpu.matmul %44, %45, %cst_26 {dimension_numbers = #tpu.dot_dimension_numbers<[1], [0], [0], [1], [0, 0, 1, 1], [], []>} : vector<8x64xbf16>, vector<64x64xbf16>, vector<8x64xf32> -> vector<8x64xf32>
    %c0_27 = arith.constant 0 : index
    %c0_28 = arith.constant 0 : index
    %47 = vector.load %arg10[%c0_27, %c0_28] : memref<1x64xbf16, #tpu.memory_space<vmem>>, vector<1x64xbf16>
    %48 = arith.extf %47 : vector<1x64xbf16> to vector<1x64xf32>
    %49 = vector.broadcast %48 : vector<1x64xf32> to vector<8x64xf32>
    %50 = arith.addf %46, %49 : vector<8x64xf32>
    %51 = vector.shape_cast %50 : vector<8x64xf32> to vector<1x8x64xf32>
    %52 = arith.truncf %51 : vector<1x8x64xf32> to vector<1x8x64xbf16>
    %c0_29 = arith.constant 0 : index
    %c0_30 = arith.constant 0 : index
    %c0_31 = arith.constant 0 : index
    %53 = vector.load %arg11[%c0_29, %c0_30, %c0_31] : memref<1x8x64xbf16, #tpu.memory_space<vmem>>, vector<1x8x64xbf16>
    tpu.vector_store %arg11[%c0_29, %c0_30, %c0_31], %52 {strides = array<i32>} : memref<1x8x64xbf16, #tpu.memory_space<vmem>>, vector<1x8x64xbf16>,
    %54 = vector.shape_cast %38 : vector<1x8x1xf32> to vector<1x1x8xf32>
    %c0_32 = arith.constant 0 : index
    %c0_33 = arith.constant 0 : index
    %c0_34 = arith.constant 0 : index
    %55 = vector.load %arg12[%c0_32, %c0_33, %c0_34] : memref<1x1x8xf32, #tpu.memory_space<vmem>>, vector<1x1x8xf32>
    tpu.vector_store %arg12[%c0_32, %c0_33, %c0_34], %54 {strides = array<i32>} : memref<1x1x8xf32, #tpu.memory_space<vmem>>, vector<1x1x8xf32>,
    return
  }
  func.func @transform_0(%arg0: i32) -> (i32, i32, i32) {
    %c0_i32 = arith.constant 0 : i32
    %c0_i32_0 = arith.constant 0 : i32
    %c0_i32_1 = arith.constant 0 : i32
    return %arg0, %c0_i32, %c0_i32_0 : i32, i32, i32
  }
  func.func @transform_1(%arg0: i32) -> (i32, i32, i32) {
    %c0_i32 = arith.constant 0 : i32
    %c0_i32_0 = arith.constant 0 : i32
    %c0_i32_1 = arith.constant 0 : i32
    return %arg0, %c0_i32, %c0_i32_0 : i32, i32, i32
  }
  func.func @transform_2(%arg0: i32) -> (i32, i32) {
    %c0_i32 = arith.constant 0 : i32
    %c0_i32_0 = arith.constant 0 : i32
    %c0_i32_1 = arith.constant 0 : i32
    return %c0_i32, %c0_i32_0 : i32, i32
  }
  func.func @transform_3(%arg0: i32) -> (i32, i32) {
    %c0_i32 = arith.constant 0 : i32
    %c0_i32_0 = arith.constant 0 : i32
    %c0_i32_1 = arith.constant 0 : i32
    return %c0_i32, %c0_i32_0 : i32, i32
  }
  func.func @transform_4(%arg0: i32) -> (i32, i32) {
    %c0_i32 = arith.constant 0 : i32
    %c0_i32_0 = arith.constant 0 : i32
    %c0_i32_1 = arith.constant 0 : i32
    return %c0_i32, %c0_i32_0 : i32, i32
  }
  func.func @transform_5(%arg0: i32) -> (i32, i32) {
    %c0_i32 = arith.constant 0 : i32
    %c0_i32_0 = arith.constant 0 : i32
    %c0_i32_1 = arith.constant 0 : i32
    return %c0_i32, %c0_i32_0 : i32, i32
  }
  func.func @transform_6(%arg0: i32) -> (i32, i32) {
    %c0_i32 = arith.constant 0 : i32
    %c0_i32_0 = arith.constant 0 : i32
    %c0_i32_1 = arith.constant 0 : i32
    return %c0_i32, %c0_i32_0 : i32, i32
  }
  func.func @transform_7(%arg0: i32) -> (i32, i32) {
    %c0_i32 = arith.constant 0 : i32
    %c0_i32_0 = arith.constant 0 : i32
    %c0_i32_1 = arith.constant 0 : i32
    return %c0_i32, %c0_i32_0 : i32, i32
  }
  func.func @transform_8(%arg0: i32) -> (i32, i32) {
    %c0_i32 = arith.constant 0 : i32
    %c0_i32_0 = arith.constant 0 : i32
    %c0_i32_1 = arith.constant 0 : i32
    return %c0_i32, %c0_i32_0 : i32, i32
  }
  func.func @transform_9(%arg0: i32) -> (i32, i32) {
    %c0_i32 = arith.constant 0 : i32
    %c0_i32_0 = arith.constant 0 : i32
    %c0_i32_1 = arith.constant 0 : i32
    return %c0_i32, %c0_i32_0 : i32, i32
  }
  func.func @transform_10(%arg0: i32) -> (i32, i32, i32) {
    %c0_i32 = arith.constant 0 : i32
    %c0_i32_0 = arith.constant 0 : i32
    %c0_i32_1 = arith.constant 0 : i32
    return %arg0, %c0_i32, %c0_i32_0 : i32, i32, i32
  }
  func.func @transform_11(%arg0: i32) -> (i32, i32, i32) {
    %c0_i32 = arith.constant 0 : i32
    %c0_i32_0 = arith.constant 0 : i32
    %c0_i32_1 = arith.constant 0 : i32
    return %arg0, %c0_i32, %c0_i32_0 : i32, i32, i32
  }
}

</mosaic_0001>

<bundles_post_ra>
// kernel: tpu_custom_call.1
= control target key start
LH: loop header
LB: loop body
LE: loop exit
PB: predicated region body
PF: predicated region fallthrough
CT: control target
= control target key end

     0   :  { %s1720_s0 = inlined_call_operand.hbm [shape: bf16[2,8,32], index: 0, kind: input, shape index: {}]   ;;  %s1721_s1 = inlined_call_operand.hbm [shape: bf16[2,8,32], index: 1, kind: input, shape index: {}]   ;;  %s1722_s2 = inlined_call_operand.hbm [shape: bf16[32,64], index: 2, kind: input, shape index: {}]   ;;  %s1723_s3 = inlined_call_operand.vmem [shape: bf16[1,64], index: 3, kind: input, shape index: {}]   ;;  %s1724_s4 = inlined_call_operand.hbm [shape: bf16[32,64], index: 4, kind: input, shape index: {}]   ;;  %s1725_s5 = inlined_call_operand.vmem [shape: bf16[1,64], index: 5, kind: input, shape index: {}]   ;;  %s1726_s6 = inlined_call_operand.hbm [shape: bf16[32,64], index: 6, kind: input, shape index: {}]   ;;  %s1727_s7 = inlined_call_operand.vmem [shape: bf16[1,64], index: 7, kind: input, shape index: {}]   ;;  %s1728_s8 = inlined_call_operand.hbm [shape: bf16[64,64], index: 8, kind: input, shape index: {}]   ;;  %s1729_s9 = inlined_call_operand.vmem [shape: bf16[1,64], index: 9, kind: input, shape index: {}]   ;;  %s1730_s10 = inlined_call_operand.hbm [shape: bf16[2,8,64], index: 10, kind: output, shape index: {0}]   ;;  %s1731_s11 = inlined_call_operand.hbm [shape: f32[2,1,8], index: 11, kind: output, shape index: {1}]  }
   0x1   :  { %1738 = sst [smem:[#allocation29_spill]] %s1722_s2 }
   0x2   :  { %1739 = sst [smem:[#allocation30_spill]] %s1724_s4 }
   0x3   :  { %1740 = sst [smem:[#allocation31_spill]] %s1726_s6 }
   0x4   :  { %1741 = sst [smem:[#allocation32_spill]] %s1728_s8 }
   0x5   :  { %17 = vsyncpa [#allocation3], 0 }
   0x6   :  { %19 = vsyncpa [#allocation3 + $0x1], 0 }
   0x7   :  { %20 = vsyncpa [#allocation6], 0 }
   0x8   :  { %22 = vsyncpa [#allocation6 + $0x1], 0 }
   0x9   :  { %23 = vsyncpa [#allocation9], 0 }
   0xa   :  { %24 = vsyncpa [#allocation12], 0 }
   0xb   :  { %25 = vsyncpa [#allocation4], 0 }
   0xc   :  { %27 = vsyncpa [#allocation4 + $0x1], 0 }
   0xd   :  { %28 = vsyncpa [#allocation15], 0 }
   0xe   :  { %30 = vsyncpa [#allocation15 + $0x1], 0  ;;  %s1480_s17 = smov 0   ;;  %s1482_s18 = smov 0  }
   0xf   :  { %s1484_s19 = smov 0   ;;  %s1486_s20 = smov 0  }
  0x10 LB: > { %1742 = sst [smem:[#allocation23_spill]] %s1400_s17  ;;  %s1504_s24 = sadd.s32 4294967295, %s1412_s20   ;;  %s1412_s20 = sphi %s1486_s20, %s1763_s20   ;;  %s1408_s19 = sphi %s1484_s19, %s1765_s19   ;;  %s1404_s18 = sphi %s1482_s18, %s1767_s18   ;;  %s1400_s17 = sphi %s1480_s17, %s1766_s17  }
  0x11   : > { %1743 = sst [smem:[#allocation24_spill]] %s1408_s19  ;;  %p937_p0 = scmp.ge.s32.totalorder %s1412_s20, 1 }
  0x12   : > { %1744 = sst [smem:[#allocation25_spill]] %s1412_s20  ;;  %p57_p1 = scmp.eq.s32.totalorder %s1504_s24, 0 }
  0x13   : > { %s1745_s2 = sld [smem:[#allocation29_spill]]  ;;  %p313_p2 = scmp.lt.s32.totalorder %s1412_s20, 3 }
  0x14   : > { %s1414_s26 = smov [#allocation7]   ;;  %s1747_s4 = sld [smem:[#allocation30_spill]] }
  0x15   : > { %p1509_p3 = pnand %p937_p0, %p313_p2  ;;  %s326_s27 = sshll.u32 %s1414_s26, 4  ;;  %s327_s27 = int_to_ptr.vmem [resolvable:$true] %s326_s27 }
  0x16   : > { %s1749_s6 = sld [smem:[#allocation31_spill]]  ;;  %s1415_s16 = smov [#allocation8]  }
  0x17   : > { %p1039_p4 = pneg %p1509_p3  ;;  %s343_s21 = sshll.u32 %s1415_s16, 4  ;;  %s344_s21 = int_to_ptr.vmem [resolvable:$true] %s343_s21 }
  0x18   : > { %s1416_s22 = smov 64   ;;  %s1417_s26 = smov 4  }
  0x19   : > { %s324_s23 = sshll.u32 %s1745_s2, 4  ;;  %p1521_p6 = pnand %p1039_p4, %p57_p1  ;;  %s325_s23 = int_to_ptr.hbm [resolvable:$true] %s324_s23 }
  0x1a   : > { %s341_s30 = sshll.u32 %s1747_s4, 4  ;;  %s1750_s8 = sld [smem:[#allocation32_spill]]  ;;  %s342_s30 = int_to_ptr.hbm [resolvable:$true] %s341_s30 }
  0x1b   : > { %1042 = dma.hbm_to_vmem [thread:$0]  (!%p1521_p6), %s325_s23, 256, %s327_s27, [#allocation6], %s1416_s22, %s1416_s22, %s1417_s26  }
  0x1c   : > { %s358_s15 = sshll.u32 %s1749_s6, 4  ;;  %s1418_s14 = smov [#allocation10]   ;;  %s359_s15 = int_to_ptr.hbm [resolvable:$true] %s358_s15 }
  0x1d   : > { %1045 = dma.hbm_to_vmem [thread:$0]  (!%p1521_p6), %s342_s30, 256, %s344_s21, [#allocation9], %s1416_s22, %s1416_s22, %s1417_s26  }
  0x1e   : > { %s360_s16 = sshll.u32 %s1418_s14, 4  ;;  %s1419_s23 = smov [#allocation11]   ;;  %s361_s16 = int_to_ptr.vmem [resolvable:$true] %s360_s16 }
  0x1f   : > { %1048 = dma.hbm_to_vmem [thread:$0]  (!%p1521_p6), %s359_s15, 256, %s361_s16, [#allocation9], %s1416_s22, %s1416_s22, %s1417_s26  }
  0x20   : > { %s375_s13 = sshll.u32 %s1750_s8, 4  ;;  %s377_s27 = sshll.u32 %s1419_s23, 4  ;;  %s376_s13 = int_to_ptr.hbm [resolvable:$true] %s375_s13  ;;  %s378_s27 = int_to_ptr.vmem [resolvable:$true] %s377_s27 }
  0x21   : > { %1051 = dma.hbm_to_vmem [thread:$0]  (!%p1521_p6), %s376_s13, 512, %s378_s27, [#allocation12], %s1416_s22, %s1416_s22, %s1417_s26  }
  0x22   : > { %s936_s30 = sadd.s32 4294967294, %s1412_s20   ;;  %s1541_s21 = sadd.s32 1, %s1412_s20  }
  0x23   : > { %1751 = sst [smem:[#allocation26_spill]] %s1541_s21  ;;  %s40_s28 = ssub.s32 %s1412_s20, %s1541_s21 }
  0x24   : > { %s43_s29 = sadd.s32 1, %s1408_s19  ;;  %p41_p7 = scmp.eq.s32.totalorder %s40_s28, 0 }
  0x25   : > { %p50_p8 = scmp.ne.s32.totalorder %s1408_s19, %s1404_s18  ;;  %p51_p9 = scmp.eq.s32.totalorder %s1412_s20, 0 }
  0x26   : > { %p56_p10 = scmp.ne.s32.totalorder %s1404_s18, %s1400_s17  ;;  %p274_p13 = scmp.eq.s32.totalorder %s1504_s24, 1 }
  0x27   : > { %s1552_s15 = scalar_select %p41_p7, %s1408_s19, %s43_s29  }
  0x28   : > { %p1554_p11 = por %p51_p9, %p50_p8  ;;  %p1560_p12 = por %p57_p1, %p56_p10 }
  0x29   : > { %1752 = sst [smem:[#allocation27_spill]] %s1552_s15  ;;  %p280_p0 = scmp.eq.s32.totalorder %s936_s30, 1 }
  0x2a   : > { %p1070_p2 = scmp.lt.s32.totalorder %s1412_s20, 2  ;;  %s394_s22 = sand.u32 1, %s1408_s19  }
  0x2b   : > { %p1567_p4 = por %p274_p13, %p50_p8  ;;  %p1571_p6 = por %p280_p0, %p56_p10 }
  0x2c   : > { %s1575_s16 = sshll.u32 %s394_s22, 2  ;;  %s944_s23 = sshll.u32 %s1412_s20, 2 }
  0x2d   : > { %s1756_s13 = scalar_select %p1571_p6, 1, 0 }
  0x2e   : > { %s402_s29 = scalar_lea.hbm %s1720_s0, %s944_s23  ;;  %s398_s2 = scalar_lea.vmem [#allocation2], %s1575_s16 }
  0x2f   : > { %1757 = sst [smem:[#allocation28_spill]] %s1756_s13  ;;  %s406_s30 = sshll.u32 %s398_s2, 4  ;;  %s407_s30 = int_to_ptr.vmem [resolvable:$true] %s406_s30 }
  0x30   : > { %s404_s4 = sshll.u32 %s402_s29, 4  ;;  %p1584_p7 = pnand %p1070_p2, %p1554_p11  ;;  %s405_s4 = int_to_ptr.hbm [resolvable:$true] %s404_s4 }
  0x31   : > { %s421_s19 = scalar_lea.hbm %s1721_s1, %s944_s23  ;;  %s413_s21 = sand.u32 1, %s1412_s20  }
  0x32   : > { %s395_s13 = scalar_lea.sflag [#allocation3], %s394_s22  ;;  %s1238_s27 = sshra.s32 %s405_s4, 4  ;;  %s1239_s27 = int_to_ptr.hbm [resolvable:$true] %s1238_s27 }
  0x33   : > { %s1240_s28 = scalar_lea.hbm %s1239_s27, 4  ;;  %p1242_p9 = pneg %p1584_p7 }
  0x34   : > { %p1241_p8 = scmp.ne.s32.totalorder %s1239_s27, %s1240_s28  ;;  %s1245_s29 = scalar_lea.hbm %s1720_s0, 8 }
  0x35   : > { %p1246_p13 = scmp.lt.s32.totalorder %s1239_s27, %s1720_s0  ;;  %p1247_p0 = scmp.lt.s32.totalorder %s1245_s29, %s1240_s28 }
  0x36   : > { %p1243_p10 = pnand %p1242_p9, %p1241_p8 }
  0x37   : > { %p1248_p2 = por %p1247_p0, %p1246_p13 }
  0x38   : > { %p1244_p11 = pneg %p1243_p10 }
  0x3a   : > { %p1249_p5 = pnand %p1248_p2, %p1244_p11 }
  0x3c   : > { %1252 = shalt.err (!%p1249_p5)
}
  0x3d   : > { %1055 = dma.hbm_to_vmem [thread:$0]  (!%p1584_p7), %s405_s4, 64, %s407_s30, %s395_s13  }
  0x3e   : > { %s423_s22 = sshll.u32 %s421_s19, 4  ;;  %s417_s23 = scalar_lea.vmem [#allocation5], %s1575_s16  ;;  %s424_s22 = int_to_ptr.hbm [resolvable:$true] %s423_s22 }
  0x3f   : > { %s425_s20 = sshll.u32 %s417_s23, 4  ;;  %s414_s2 = scalar_lea.sflag [#allocation6], %s413_s21  ;;  %s426_s20 = int_to_ptr.vmem [resolvable:$true] %s425_s20 }
  0x40   : > { %s1268_s14 = sshra.s32 %s424_s22, 4  ;;  %s1275_s29 = scalar_lea.hbm %s1721_s1, 8  ;;  %s1269_s14 = int_to_ptr.hbm [resolvable:$true] %s1268_s14 }
  0x41   : > { %s1270_s17 = scalar_lea.hbm %s1269_s14, 4  ;;  %p1276_p5 = scmp.lt.s32.totalorder %s1269_s14, %s1721_s1 }
  0x42   : > { %p1271_p8 = scmp.ne.s32.totalorder %s1269_s14, %s1270_s17  ;;  %p1277_p13 = scmp.lt.s32.totalorder %s1275_s29, %s1270_s17 }
  0x44   : > { %p1273_p10 = pnand %p1271_p8, %p1242_p9  ;;  %p1278_p0 = por %p1277_p13, %p1276_p5 }
  0x46   : > { %p1274_p11 = pneg %p1273_p10 }
  0x48   : > { %p1279_p2 = pnand %p1278_p0, %p1274_p11 }
  0x4a   : > { %1282 = shalt.err (!%p1279_p2)
}
  0x4b   : > { %1058 = dma.hbm_to_vmem [thread:$0]  (!%p1584_p7), %s424_s22, 64, %s426_s20, %s414_s2  }
  0x4c   : > { %434 = sbr.rel (%p1509_p3) target bundleno = 887 (0x377), region = 60  ;;  %s1620_s19 = sand.u32 (!%p1509_p3), 1, %s1404_s18  }
  0x4d   : > { %s1623_s21 = sshll.u32 (!%p1509_p3), %s1620_s19, 2  ;;  %s437_s13 = scalar_lea.sflag (!%p1509_p3), [#allocation3], %s1620_s19 }
  0x4e   : > { %s440_s17 = scalar_lea.vmem (!%p1509_p3), [#allocation2], %s1623_s21 }
  0x51   : > { %1371 = dma.done.wait (%p1560_p12), %s437_s13, 64  }
  0x52   : > { %1373 = vsyncadd (%p1560_p12), %s437_s13, 4294967232  ;;  %s446_s6 = sand.u32 1, %s1504_s24   ;;  %s450_s25 = scalar_lea.vmem [#allocation5], %s1623_s21 }
  0x53   : > { %s447_s20 = scalar_lea.sflag [#allocation6], %s446_s6 }
  0x54   : > { %1375 = dma.done.wait (%p1560_p12), %s447_s20, 64  }
  0x55   : > { %1377 = vsyncadd (%p1560_p12), %s447_s20, 4294967232 }
  0x56   : > { %1379 = dma.done.wait (%p57_p1), [#allocation6], 256  }
  0x57   : > { %1381 = vsyncadd (%p57_p1), [#allocation6], 4294967040 }
  0x58   : > { %1383 = dma.done.wait (%p57_p1), [#allocation9], 512  }
  0x59   : > { %1385 = vsyncadd (%p57_p1), [#allocation9], 4294966784 }
  0x5a   : > { %1387 = dma.done.wait (%p57_p1), [#allocation12], 512  }
  0x5b   : > { %1389 = vsyncadd (%p57_p1), [#allocation12], 4294966784  ;;  %v1006_v0 = vld [vmem:[#allocation7 + $0x8] sm:$0xff]  ;;  %v1008_v1 = vld [vmem:[#allocation8 + $0x8] sm:$0xff]  ;;  %vm541_vm0 = vcmask 261120   ;;  %vm629_vm1 = vcmask 523264   ;;  %v738_v44 = vlaneseq  ;;  %s772_s28 = scalar_lea.hbm %s1731_s11, %s1504_s24 }
  0x5c   : > { %551 = vmatpush.bf16.msra.mxu0 %v1006_v0  ;;  %588 = vmatpush.bf16.msra.mxu1 %v1008_v1  ;;  %v1005_v2 = vld [vmem:[#allocation7] sm:$0xff]  ;;  %v1007_v3 = vld [vmem:[#allocation8] sm:$0xff]  ;;  %v521_v5 = vld [vmem:[%s450_s25] sm:$0xf]  ;;  %vm649_vm2 = vcmask 64512   ;;  %vm665_vm3 = vcmask 1043456  }
  0x5d   : > { %v520_v4 = vld [vmem:[%s440_s17] sm:$0xf]  ;;  %v1010_v22 = vld [vmem:[#allocation10 + $0x8] sm:$0xff]  ;;  %v1009_v23 = vld [vmem:[#allocation10] sm:$0xff]  ;;  %v739_v46 = vand.u32 127, %v738_v44  ;;  %vm742_vm4 = vcmask 57344  }
  0x5e   : > { %v526_v6 = vld [vmem:[%s1723_s3] sm:$0x1]  ;;  %621 = vmatpush.bf16.msra.mxu2 %v1010_v22  ;;  %v1014_v40 = vld [vmem:[#allocation11 + $0x18] sm:$0xff]  ;;  %v1013_v41 = vld [vmem:[#allocation11 + $0x10] sm:$0xff]  ;;  %s518_s2 = scalar_lea.vmem [#allocation14], %s1620_s19  ;;  %s776_s8 = sshll.u32 %s772_s28, 4  ;;  %s777_s8 = int_to_ptr.hbm [resolvable:$true] %s776_s8 }
  0x5f   : > { %v564_v7 = vld [vmem:[%s1725_s5] sm:$0x1]  ;;  %v527_v8 = vunpack.c.l.bf16 %v526_v6  ;;  %v1012_v42 = vld [vmem:[#allocation11 + $0x8] sm:$0xff]  ;;  %s774_s29 = sshll.u32 %s518_s2, 4  ;;  %s750_s4 = scalar_lea.sflag [#allocation15], %s1620_s19  ;;  %s775_s29 = int_to_ptr.vmem [resolvable:$true] %s774_s29 }
  0x60   : > { %552 = vmatpush.bf16.msra.mxu0 %v1005_v2  ;;  %589 = vmatpush.bf16.msra.mxu1 %v1007_v3  ;;  %v565_v9 = vunpack.c.l.bf16 %v564_v7  ;;  %v600_v27 = vld [vmem:[%s1727_s7] sm:$0x1]  ;;  %s1312_s13 = sshra.s32 %s777_s8, 4  ;;  %s1318_s25 = scalar_lea.hbm %s1731_s11, 2  ;;  %s1313_s13 = int_to_ptr.hbm [resolvable:$true] %s1312_s13 }
  0x61   : > { %v528_v10 = vperm.slane %v527_v8, 0  ;;  %v601_v28 = vunpack.c.l.bf16 %v600_v27  ;;  %v1011_v43 = vld [vmem:[#allocation11] sm:$0xff]  ;;  %s1314_s17 = scalar_lea.hbm %s1313_s13, 1  ;;  %p1319_p7 = scmp.lt.s32.totalorder %s1313_s13, %s1731_s11 }
  0x62   : > { %v566_v11 = vperm.slane %v565_v9, 0  ;;  %622 = vmatpush.bf16.msra.mxu2 %v1009_v23  ;;  %p1315_p1 = scmp.ne.s32.totalorder %s1313_s13, %s1314_s17  ;;  %p1320_p9 = scmp.lt.s32.totalorder %s1318_s25, %s1314_s17 }
  0x63   : > { %963 = vmatmul.msk.bf16.vlgmr.msra.gmra.mxu0 %vm541_vm0, %v520_v4  ;;  %972 = vmatmul.msk.bf16.vlgmr.msra.gmra.mxu1 %vm541_vm0, %v521_v5  ;;  %v602_v29 = vperm.slane %v601_v28, 0 }
  0x64   : > { %725 = vmatpush.bf16.msrb.mxu1 %v1014_v40  ;;  %p1316_p3 = pnand %p1315_p1, %p1567_p4  ;;  %p1321_p8 = por %p1320_p9, %p1319_p7 }
  0x65   : > { %981 = vmatmul.msk.bf16.vlgmr.msra.gmra.mxu2 %vm541_vm0, %v521_v5 }
  0x66   : > { %p1317_p12 = pneg %p1316_p3 }
  0x68   : > { %726 = vmatpush.bf16.msrb.mxu1 %v1013_v41  ;;  %p1322_p10 = pnand %p1321_p8, %p1317_p12 }
  0x6c   : > { %727 = vmatpush.bf16.msrb.mxu1 %v1012_v42 }
  0x70   : > { %728 = vmatpush.bf16.msrb.mxu1 %v1011_v43 }
  0xe0   : > { %v554_v12 = vpop.f32.mrf.mxu0  ;;  %v591_v13 = vpop.f32.mrf.mxu1 }
  0xe1   : > { %v555_v14 = vadd.f32 %v554_v12, %v528_v10  ;;  %v592_v15 = vadd.f32 %v591_v13, %v566_v11 }
  0xe3   : > { %v595_v16 = vpack.c.bf16 %v592_v15, %v592_v15  ;;  %v558_v17 = vmul.f32 0.125, %v555_v14 }
  0xe5   : > { %v634_v18 = vsel %vm629_vm1, %v595_v16, 0  ;;  %v559_v21 = vpack.c.bf16 %v558_v17, %v558_v17 }
  0xe6   : > { %643 = vmatpush.bf16.xpose.msra.mxu3 %v634_v18 }
  0xe8   : > { %v556_v19 = vpop.f32.mrf.mxu0  ;;  %v593_v20 = vpop.f32.mrf.mxu1 }
  0xe9   : > { %v624_v30 = vpop.f32.mrf.mxu2 }
  0xea   : > { %v625_v32 = vadd.f32 %v624_v30, %v602_v29 }
  0xec   : > { %v628_v34 = vpack.c.bf16 %v625_v32, %v625_v32 }
  0xed   : > { %982 = vmatmul.msk.bf16.vlgmr.msra.gmra.mxu3 %vm629_vm1, %v559_v21 }
  0xee   : > { %v667_v36 = vsel %vm665_vm3, %v628_v34, 0 }
  0xef   : > { %676 = vmatpush.bf16.msrb.mxu0 %v667_v36 }
  0xf1   : > { %v626_v37 = vpop.f32.mrf.mxu2 }
 0x170   : > { %v645_v24 = vpop.f32.mrf.mxu3 }
 0x171   : > { %v650_v25 = vsel %vm649_vm2, %v645_v24, -inf }
 0x172   : > { %651 = vmax.xlane.f32.xlu0 %v650_v25 }
 0x178   : > { %v647_v26 = vpop.f32.mrf.mxu3 }
 0x1e5   : > { %v652_v31 = vpop.xlane.xlu0 %651 }
 0x1e6   : > { %v653_v33 = vsub.f32 %v645_v24, %v652_v31 }
 0x1e8   : > { %v654_v35 = vmul.f32 1.442695, %v653_v33 }
 0x1ea   : > { %1114 = vpow2.f32 %v654_v35 }
 0x1f0   : > { %v1115_v38 = vpop.eup %1114 }
 0x1f1   : > { %v656_v39 = vsel %vm649_vm2, %v1115_v38, 0.0 }
 0x1f2   : > { %657 = vadd.xlane.f32.xlu0 %v656_v39 }
 0x265   : > { %v658_v45 = vpop.xlane.xlu0 %657 }
 0x266   : > { %1116 = vrcp.f32 %v658_v45 }
 0x26c   : > { %v1117_v47 = vpop.eup %1116 }
 0x26d   : > { %v660_v48 = vmul.f32 %v1117_v47, %v1115_v38  ;;  %v740_v49 = vperm.slane %v1117_v47, %v739_v46 }
 0x26f   : > { %v661_v50 = vpack.c.bf16 %v660_v48, %v660_v48  ;;  %743 = vst.msk [vmem:[%s518_s2] sm:$0x1] %vm742_vm4, %v740_v49 }
 0x271   : > { %983 = vmatmul.msk.bf16.vlgmr.msrb.gmra.mxu0 %vm649_vm2, %v661_v50 }
 0x2ee   : > { %v678_v51 = vpop.f32.mrf.mxu0 }
 0x2ef   : > { %v682_v52 = vpack.c.bf16 %v678_v51, %v678_v51 }
 0x2f1   : > { %1000 = vmatmul.msk.bf16.vlgmr.msrb.gmra.mxu1 %vm629_vm1, %v682_v52 }
 0x2f6   : > { %v680_v53 = vpop.f32.mrf.mxu0 }
 0x2f7   : > { %1325 = shalt.err (!%p1322_p10)
}
 0x2f8   : > { %1036 = dma.vmem_to_hbm [thread:$0]  (%p1567_p4), %s775_s29, 16, %s777_s8, %s750_s4   ;;  %v691_v54 = vld [vmem:[%s1729_s9] sm:$0x1]  ;;  %vm735_vm5 = vcmask 519168  }
 0x2f9   : > { %v692_v55 = vunpack.c.l.bf16 %v691_v54  ;;  %s1002_s22 = sshll.u32 %s1504_s24, 2  ;;  %s512_s27 = scalar_lea.vmem [#allocation13], %s1623_s21 }
 0x2fa   : > { %s759_s14 = scalar_lea.hbm %s1730_s10, %s1002_s22  ;;  %s761_s28 = sshll.u32 %s512_s27, 4  ;;  %s762_s28 = int_to_ptr.vmem [resolvable:$true] %s761_s28 }
 0x2fb   : > { %v693_v56 = vperm.slane %v692_v55, 0  ;;  %s763_s13 = sshll.u32 %s759_s14, 4  ;;  %s745_s29 = scalar_lea.sflag [#allocation4], %s1620_s19  ;;  %s764_s13 = int_to_ptr.hbm [resolvable:$true] %s763_s13 }
 0x2fc   : > { %s1340_s8 = sshra.s32 %s764_s13, 4  ;;  %s1346_s21 = scalar_lea.hbm %s1730_s10, 8  ;;  %s1341_s8 = int_to_ptr.hbm [resolvable:$true] %s1340_s8 }
 0x2fd   : > { %s1342_s24 = scalar_lea.hbm %s1341_s8, 4  ;;  %p1347_p0 = scmp.lt.s32.totalorder %s1341_s8, %s1730_s10 }
 0x2fe   : > { %p1343_p11 = scmp.ne.s32.totalorder %s1341_s8, %s1342_s24  ;;  %p1348_p2 = scmp.lt.s32.totalorder %s1346_s21, %s1342_s24 }
 0x300   : > { %p1344_p5 = pnand %p1343_p11, %p1567_p4  ;;  %p1349_p1 = por %p1348_p2, %p1347_p0 }
 0x302   : > { %p1345_p13 = pneg %p1344_p5 }
 0x304   : > { %p1350_p3 = pnand %p1349_p1, %p1345_p13 }
 0x36e   : > { %v730_v57 = vpop.f32.mrf.mxu1 }
 0x36f   : > { %v731_v58 = vadd.f32 %v730_v57, %v693_v56 }
 0x371   : > { %v734_v59 = vpack.c.bf16 %v731_v58, %v731_v58 }
 0x373   : > { %736 = vst.msk [vmem:[%s512_s27] sm:$0xf] %vm735_vm5, %v734_v59 }
 0x374   : > { %1353 = shalt.err (!%p1350_p3)
}
 0x375   : > { %1035 = dma.vmem_to_hbm [thread:$0]  (%p1567_p4), %s762_s28, 64, %s764_s13, %s745_s29  }
 0x376   : > { %v732_v60 = vpop.f32.mrf.mxu1 }
 0x377 PF: > { %s1759_s19 = sld [smem:[#allocation23_spill]] }
 0x378   : > { %s1761_s12 = sld [smem:[#allocation25_spill]] }
 0x37d   : > { %s788_s16 = sand.u32 1, %s1759_s19  }
 0x37e   : > { %p1762_p12 = scmp.ge.s32.totalorder %s1761_s12, 2  ;;  %s789_s30 = scalar_lea.sflag [#allocation4], %s788_s16 }
 0x380   : > { %p1060_p7 = pnand %p1762_p12, %p1571_p6 }
 0x382   : > { %p1061_p9 = pneg %p1060_p7 }
 0x384   : > { %1391 = dma.done.wait (%p1061_p9), %s789_s30, 64  }
 0x385   : > { %1393 = vsyncadd (%p1061_p9), %s789_s30, 4294967232  ;;  %s799_s15 = scalar_lea.sflag [#allocation15], %s788_s16 }
 0x386   : > { %1395 = dma.done.wait (%p1061_p9), %s799_s15, 16  }
 0x387   : > { %1397 = vsyncadd (%p1061_p9), %s799_s15, 4294967280  ;;  %s1763_s20 = sld [smem:[#allocation26_spill]]  ;;  %s1766_s17 = smov %s1404_s18 }
 0x388   : > { %s1764_s26 = sld [smem:[#allocation24_spill]] }
 0x389   : > { %s1765_s19 = sld [smem:[#allocation27_spill]] }
 0x38d   : > { %p33_p4 = scmp.ge.s32.totalorder %s1763_s20, 4  }
 0x38e   : > { %s1767_s18 = smov %s1764_s26 }
 0x38f   :  { %35 = sbr.rel (!%p33_p4) target bundleno = 16 (0x10), region = 151 }
 0x394   :  { %804 = vsyncpa [#allocation3], 1 }
 0x395   :  { %806 = vsyncpa [#allocation3 + $0x1], 1 }
 0x396   :  { %807 = vsyncpa [#allocation6], 1 }
 0x397   :  { %809 = vsyncpa [#allocation6 + $0x1], 1 }
 0x398   :  { %810 = vsyncpa [#allocation9], 1 }
 0x399   :  { %811 = vsyncpa [#allocation12], 1 }
 0x39a   :  { %812 = vsyncpa [#allocation4], 1 }
 0x39b   :  { %814 = vsyncpa [#allocation4 + $0x1], 1 }
 0x39c   :  { %815 = vsyncpa [#allocation15], 1 }
 0x39d   :  { %817 = vsyncpa [#allocation15 + $0x1], 1 }

</bundles_post_ra>
